<compile_context>
chip_gen: v6e
topology: v6e:2x2x1
jax: 0.10.0
libtpu: 0.0.40
codegen_flags: <defaults>
</compile_context>

<pallas_src>
import jax
import jax.numpy as jnp
from jax.experimental import pallas as pl
from jax.experimental.pallas import tpu as pltpu


def _round_up(v, m):
    return (v + m - 1) // m * m


def _physical_vmem_bytes():
    """Per-core VMEM capacity (fallback: 64 MiB, the v7x size — conservative)."""
    phys = 64 << 20
    try:
        info = pltpu.get_tpu_info()
        phys = int(getattr(info, "vmem_capacity_bytes", phys))
    except Exception:
        pass
    return phys


def _linear_kernel(x_ref, w_ref, b_ref, o_ref):
    # x_ref: [TILE_N, F_in]   compute dtype (bf16 or f32), per-step node tile
    # w_ref: [F_in,  F_out]   compute dtype, VMEM-resident across steps
    # b_ref: [1,     F_out]   f32, VMEM-resident
    # o_ref: [TILE_N, F_out]  output dtype (= x.dtype of the caller)
    y = jnp.dot(x_ref[...], w_ref[...], preferred_element_type=jnp.float32)
    o_ref[...] = (y + b_ref[...]).astype(o_ref.dtype)


def prepare_linear_params(weight, bias, compute_dtype=jnp.bfloat16):
    """One-time prep of PyTorch-layout Linear params for the Pallas kernel.

    weight: [F_out, F_in] -> transposed W^T [F_in, F_out] in compute_dtype
    bias:   [F_out]       -> [1, F_out] in float32
    (No padding — full-width blocks are used in the kernel.)
    """
    w_t = jnp.transpose(weight).astype(compute_dtype)          # [F_in, F_out]
    b_row = bias.astype(jnp.float32).reshape(1, -1)            # [1, F_out]
    return w_t, b_row


def node_linear(x, w_t, b_row, *, tile_n=None, vmem_budget_bytes=None):
    """y = x @ W^T + b via a tiled Pallas TPU kernel.

    x:     [N, F_in]
    w_t:   [F_in, F_out]  pre-transposed weight (see prepare_linear_params)
    b_row: [1, F_out]     bias (f32)
    Returns [N, F_out] in x.dtype.
    """
    n, f_in = x.shape
    f_in_w, f_out = w_t.shape
    assert f_in == f_in_w, (f_in, f_in_w)

    cdt = w_t.dtype
    out_dtype = x.dtype
    # Upstream cast to the compute dtype: halves the dominant x read stream for
    # bf16 (free if x is already bf16 / the compute dtype is f32).
    x_c = x.astype(cdt)

    x_bytes = jnp.dtype(cdt).itemsize
    w_bytes = jnp.dtype(cdt).itemsize
    o_bytes = jnp.dtype(out_dtype).itemsize

    # Sub-32-bit dtypes pack along sublanes -> min row tile 16 for bf16.
    min_tile = 16 if x_bytes < 4 else 8

    # VMEM accounting uses lane/sublane-padded footprints (that is how blocks
    # are laid out in VMEM even though HBM traffic is unpadded), with
    # double-buffering for every BlockSpec.
    f_in_l = _round_up(f_in, 128)
    f_out_l = _round_up(f_out, 128)

    def _vmem_bytes(tn):
        return (2 * tn * f_in_l * x_bytes          # x tiles (double-buffered)
                + 2 * tn * f_out_l * o_bytes       # out tiles
                + 2 * f_in_l * f_out_l * w_bytes   # resident W (2 bufs allocated)
                + 2 * 8 * f_out_l * 4)             # resident bias

    phys_vmem = _physical_vmem_bytes()
    if vmem_budget_bytes is None:
        # ~half of physical VMEM: 64 MiB on v5e/v6e (128 MiB), 32 MiB on v7x.
        vmem_budget_bytes = min(phys_vmem // 2, 96 << 20)

    auto = tile_n is None
    if auto:
        tile_n = 2048                                  # big tiles: fewer steps
        while tile_n > min_tile and _vmem_bytes(tile_n) > vmem_budget_bytes:
            tile_n //= 2
        # Guarantee >=2 grid steps (when N allows) so ("parallel",) can span
        # both TensorCores on v7x; harmless on single-TC v5e/v6e.
        if n > 2 * min_tile:
            tile_n = min(tile_n, _round_up(pl.cdiv(n, 2), min_tile))
    if tile_n >= n:
        tile_n = n          # single full block: full dim is exempt from 8/128 rule
    else:
        tile_n = max(min_tile, _round_up(tile_n, min_tile))

    grid_n = pl.cdiv(n, tile_n)                        # partial edge block is masked

    vmem_limit = int(min(max(_vmem_bytes(tile_n) + (2 << 20), 32 << 20),
                         phys_vmem - (8 << 20)))

    out = pl.pallas_call(
        _linear_kernel,
        out_shape=jax.ShapeDtypeStruct((n, f_out), out_dtype),
        grid_spec=pl.GridSpec(
            grid=(grid_n,),
            in_specs=[
                pl.BlockSpec((tile_n, f_in), lambda i: (i, 0)),   # x tile / step
                pl.BlockSpec((f_in, f_out), lambda i: (0, 0)),    # W resident
                pl.BlockSpec((1, f_out), lambda i: (0, 0)),       # bias resident
            ],
            out_specs=pl.BlockSpec((tile_n, f_out), lambda i: (i, 0)),
        ),
        compiler_params=pltpu.CompilerParams(
            dimension_semantics=("parallel",),
            vmem_limit_bytes=vmem_limit,
        ),
        cost_estimate=pl.CostEstimate(                 # honest, unpadded numbers
            flops=2 * n * f_in * f_out,
            bytes_accessed=(n * f_in * x_bytes + n * f_out * o_bytes
                            + f_in * f_out * w_bytes + f_out * 4),
            transcendentals=0,
        ),
    )(x_c, w_t, b_row)

    return out


class Linear:
    """JAX stand-in for torch.nn.Linear backed by the Pallas kernel."""

    def __init__(self, in_features, out_features, *, key,
                 compute_dtype=jnp.bfloat16, tile_n=None):
        kw, kb = jax.random.split(key)
        bound = 1.0 / (in_features ** 0.5)
        self.weight = jax.random.uniform(
            kw, (out_features, in_features), jnp.float32, -bound, bound)
        self.bias = jax.random.uniform(
            kb, (out_features,), jnp.float32, -bound, bound)
        # One-time prep: transpose -> [F_in, F_out], cast to compute dtype.
        self._w_t, self._b_row = prepare_linear_params(
            self.weight, self.bias, compute_dtype)
        self._tile_n = tile_n

    def __call__(self, x):
        return node_linear(x, self._w_t, self._b_row, tile_n=self._tile_n)


class GraphData:
    """Minimal stand-in for torch_geometric.data.Data (attribute container)."""

    def __init__(self, **kwargs):
        for k, v in kwargs.items():
            setattr(self, k, v)


class NodeModel:
    """JAX/Pallas port of hldnn NodeModel: data.x = self.model(data.x)."""

    def __init__(self, model, *args, **kwargs):
        self.model = model(*args, **kwargs)

    def __call__(self, data):
        data.x = self.model(data.x)
        return data


if __name__ == "__main__":
    key = jax.random.PRNGKey(0)
    k_x, k_model = jax.random.split(key)

    num_nodes = 200       # not a multiple of the tile -> exercises masked edge block
    in_features = 48      # non-128 feature dims exercise full-width (unpadded) blocks
    out_features = 24

    x = jax.random.normal(k_x, (num_nodes, in_features), jnp.float32)
    data = GraphData(x=x, edge_index=jnp.zeros((2, 8), jnp.int32))

    # Auto tile_n: at N=200 the >=2-step cap yields a 112-row tile -> 2 grid steps.
    model = NodeModel(Linear, in_features, out_features, key=k_model)
    out = model(data)
    jax.block_until_ready(out.x)

    assert out.x.shape == (num_nodes, out_features)
    assert out.x.dtype == x.dtype
    assert out.edge_index.shape == (2, 8)          # carried through untouched

    # Reference (PyTorch Linear semantics): y = x @ W^T + b in f32.
    lin = model.model
    ref = x @ lin.weight.T + lin.bias

    # Default path feeds bf16 to the MXU with f32 accumulation -> loose tolerance.
    max_err = float(jnp.max(jnp.abs(out.x - ref)))
    assert jnp.allclose(out.x, ref, atol=3e-2, rtol=3e-2), f"bf16 max err {max_err}"

    # Exact-precision path (f32 compute) + explicit small tile to exercise a
    # 4-step pipelined grid with a masked partial final block.
    w32, b32 = prepare_linear_params(lin.weight, lin.bias, jnp.float32)
    y32 = node_linear(x, w32, b32, tile_n=64)
    jax.block_until_ready(y32)
    assert jnp.allclose(y32, ref, atol=1e-5, rtol=1e-5)

    print("KERNEL_OK")
</pallas_src>

<mosaic_0001>
module attributes {stable_mosaic.version = 11 : i64} {
  func.func @_linear_kernel(%arg0: i32, %arg1: memref<112x48xbf16, #tpu.memory_space<vmem>>, %arg2: memref<48x24xbf16, #tpu.memory_space<vmem>>, %arg3: memref<1x24xf32, #tpu.memory_space<vmem>>, %arg4: memref<112x24xf32, #tpu.memory_space<vmem>>) attributes {dimension_semantics = [#tpu.dimension_semantics<parallel>], iteration_bounds = array<i64: 2>, scalar_prefetch = 0 : i64, scratch_operands = 0 : i64, tpu.core_type = #tpu.core_type<tc>, window_params = [{transform_indices = @transform_0, window_bounds = array<i64: 112, 48>}, {pipeline_mode = #tpu.pipeline_mode<synchronous>, transform_indices = @transform_1, window_bounds = array<i64: 48, 24>}, {pipeline_mode = #tpu.pipeline_mode<synchronous>, transform_indices = @transform_2, window_bounds = array<i64: 1, 24>}, {transform_indices = @transform_3, window_bounds = array<i64: 112, 24>}]} {
    %c0 = arith.constant 0 : index
    %c0_0 = arith.constant 0 : index
    %0 = vector.load %arg1[%c0, %c0_0] : memref<112x48xbf16, #tpu.memory_space<vmem>>, vector<112x48xbf16>
    %c0_1 = arith.constant 0 : index
    %c0_2 = arith.constant 0 : index
    %1 = vector.load %arg2[%c0_1, %c0_2] : memref<48x24xbf16, #tpu.memory_space<vmem>>, vector<48x24xbf16>
    %cst = arith.constant dense<0.000000e+00> : vector<112x24xf32>
    %2 = tpu.matmul %0, %1, %cst {dimension_numbers = #tpu.dot_dimension_numbers<[1], [0], [0], [1], [0, 0, 1, 1], [], []>} : vector<112x48xbf16>, vector<48x24xbf16>, vector<112x24xf32> -> vector<112x24xf32>
    %c0_3 = arith.constant 0 : index
    %c0_4 = arith.constant 0 : index
    %3 = vector.load %arg3[%c0_3, %c0_4] : memref<1x24xf32, #tpu.memory_space<vmem>>, vector<1x24xf32>
    %4 = vector.broadcast %3 : vector<1x24xf32> to vector<112x24xf32>
    %5 = arith.addf %2, %4 : vector<112x24xf32>
    %c0_5 = arith.constant 0 : index
    %c0_6 = arith.constant 0 : index
    %6 = vector.load %arg4[%c0_5, %c0_6] : memref<112x24xf32, #tpu.memory_space<vmem>>, vector<112x24xf32>
    tpu.vector_store %arg4[%c0_5, %c0_6], %5 {strides = array<i32>} : memref<112x24xf32, #tpu.memory_space<vmem>>, vector<112x24xf32>,
    return
  }
  func.func @transform_0(%arg0: i32) -> (i32, i32) {
    %c0_i32 = arith.constant 0 : i32
    %c0_i32_0 = arith.constant 0 : i32
    return %arg0, %c0_i32 : i32, i32
  }
  func.func @transform_1(%arg0: i32) -> (i32, i32) {
    %c0_i32 = arith.constant 0 : i32
    %c0_i32_0 = arith.constant 0 : i32
    %c0_i32_1 = arith.constant 0 : i32
    return %c0_i32, %c0_i32_0 : i32, i32
  }
  func.func @transform_2(%arg0: i32) -> (i32, i32) {
    %c0_i32 = arith.constant 0 : i32
    %c0_i32_0 = arith.constant 0 : i32
    %c0_i32_1 = arith.constant 0 : i32
    return %c0_i32, %c0_i32_0 : i32, i32
  }
  func.func @transform_3(%arg0: i32) -> (i32, i32) {
    %c0_i32 = arith.constant 0 : i32
    %c0_i32_0 = arith.constant 0 : i32
    return %arg0, %c0_i32 : i32, i32
  }
}

</mosaic_0001>

<bundles_post_ra>
// kernel: tpu_custom_call.1
= control target key start
LH: loop header
LB: loop body
LE: loop exit
PB: predicated region body
PF: predicated region fallthrough
CT: control target
= control target key end

     0   :  { %s971_s12 = smov 0   ;;  %s973_s13 = smov 0   ;;  %s1156_s0 = inlined_call_operand.vmem [shape: bf16[200,48], index: 0, kind: input, shape index: {}]   ;;  %s1157_s1 = inlined_call_operand.vmem [shape: bf16[48,24], index: 1, kind: input, shape index: {}]   ;;  %s1158_s2 = inlined_call_operand.vmem [shape: f32[1,24], index: 2, kind: input, shape index: {}]   ;;  %s1159_s3 = inlined_call_operand.vmem [shape: f32[200,24], index: 3, kind: output, shape index: {}]  }
   0x1   :  { %s975_s14 = smov 0  }
   0x2 LB: > { %s984_s15 = sadd.s32 4294967295, %s915_s14   ;;  %s986_s16 = sadd.s32 1, %s915_s14   ;;  %s915_s14 = sphi %s975_s14, %s1166_s14   ;;  %s911_s13 = sphi %s973_s13, %s1165_s13   ;;  %s907_s12 = sphi %s971_s12, %s1164_s12  }
   0x3   : > { %s85_s17 = ssub.s32 %s915_s14, %s986_s16  ;;  %s88_s18 = sadd.s32 1, %s911_s13 }
   0x4   : > { %p86_p0 = scmp.eq.s32.totalorder %s85_s17, 0  ;;  %p98_p1 = scmp.ne.s32.totalorder %s911_s13, %s907_s12 }
   0x5   : > { %p99_p2 = scmp.eq.s32.totalorder %s984_s15, 1  ;;  %p672_p3 = scmp.ge.s32.totalorder %s915_s14, 1 }
   0x6   : > { %s994_s19 = scalar_select %p86_p0, %s911_s13, %s88_s18  }
   0x7   : > { %p996_p4 = por %p99_p2, %p98_p1  ;;  %p146_p5 = scmp.lt.s32.totalorder %s915_s14, 3 }
   0x9   : > { %p147_p6 = pnand %p672_p3, %p146_p5 }
   0xa   : > { %s1007_s25 = smul.u32 (!%p147_p6), 14, %s984_s15  ;;  %s170_s6 = sand.u32 (!%p147_p6), 1, %s907_s12  }
   0xb   : > { %150 = sbr.rel (%p147_p6) target bundleno = 306 (0x132), region = 32 }
   0xc   : > { %p178_p7 = scmp.lt.s32.totalorder (!%p147_p6), %s1007_s25, 24  ;;  %s755_s7 = smul.u32 (!%p147_p6), 112, %s170_s6 }
   0xe   : > { %s1035_s10 = scalar_lea.vmem (!%p147_p6), [#allocation2], %s755_s7  }
  0x10   : > { %v847_v0 = vld [vmem:[%s1157_s1 + $0x10] sm:$0xff]   ;;  %v949_v1 = vmov 0.0   ;;  %v848_v2 = vld [vmem:[%s1157_s1 + $0x8] sm:$0xff]   ;;  %vm950_vm0 = vmmov 0   ;;  %v849_v3 = vld [vmem:[%s1157_s1] sm:$0xff]   ;;  %s179_s28 = scalar_select %p178_p7, %s1007_s25, 24 }
  0x11   : > { %715 = vmatprep.subr.bf16.mxu0 %v949_v1  ;;  %749 = vmatprep.subr.bf16.mxu1 %v949_v1  ;;  %vm273_vm1 = vcmask 392192   ;;  %v674_v11 = vld [vmem:[%s1158_s2] ss:$0 sm:$0xff]  ;;  %vm384_vm2 = vcmask 195584   ;;  %s407_s11 = ssub.s32 (%p996_p4), 25, %s1007_s25  ;;  %s704_s12 = smul.u32 (%p996_p4), 112, %s984_s15 }
  0x12   : > { %716 = vmatpush3.bf16.msra.mxu0 %v847_v0  ;;  %752 = vmatpush3.bf16.msra.mxu1 %v847_v0  ;;  %s673_s29 = sshll.u32 %s179_s28, 2  ;;  %p408_p8 = scmp.lt.s32.totalorder (%p996_p4), %s407_s11, 14 }
  0x13   : > { %717 = vmatprep.subr.bf16.mxu0 %v949_v1  ;;  %750 = vmatprep.subr.bf16.mxu1 %v949_v1  ;;  %s181_s5 = scalar_lea.vmem %s1156_s0, %s673_s29  ;;  %s1072_s18 = scalar_lea.vmem (%p996_p4), %s1159_s3, %s704_s12  }
  0x14   : > { %721 = vmatprep.mubr.msk.bf16.mxu0 %vm950_vm0, %v949_v1  ;;  %737 = vmatprep.mubr.msk.bf16.mxu1 %vm950_vm0, %v949_v1  ;;  %v850_v4 = vld [vmem:[%s181_s5] sm:$0xff]   ;;  %v852_v6 = vld [vmem:[%s181_s5 + $0x8] sm:$0xff]   ;;  %v854_v8 = vld [vmem:[%s181_s5 + $0x10] sm:$0xff]  }
  0x15   : > { %v851_v5 = vld [vmem:[%s181_s5 + $0x20] sm:$0xff]   ;;  %v853_v7 = vld [vmem:[%s181_s5 + $0x28] sm:$0xff]   ;;  %v855_v9 = vld [vmem:[%s181_s5 + $0x30] sm:$0xff]  }
  0x16   : > { %718 = vmatpush3.bf16.msra.mxu0 %v848_v2  ;;  %753 = vmatpush3.bf16.msra.mxu1 %v848_v2  ;;  %v856_v10 = vld [vmem:[%s181_s5 + $0x18] sm:$0xff]  }
  0x17   : > { %719 = vmatprep.subr.bf16.mxu0 %v949_v1  ;;  %751 = vmatprep.subr.bf16.mxu1 %v949_v1 }
  0x1a   : > { %720 = vmatpush3.bf16.msra.mxu0 %v849_v3  ;;  %754 = vmatpush3.bf16.msra.mxu1 %v849_v3 }
  0x1d   : > { %722 = vmatmul.mubr.msk.bf16.vlgmr.msra.gmra.mxu0 %vm273_vm1, %v850_v4  ;;  %738 = vmatmul.mubr.msk.bf16.vlgmr.msra.gmra.mxu1 %vm273_vm1, %v851_v5 }
  0x1e   : > { %725 = vmatprep.mubr.msk.bf16.mxu0 %vm950_vm0, %v949_v1  ;;  %741 = vmatprep.mubr.msk.bf16.mxu1 %vm950_vm0, %v949_v1 }
  0x25   : > { %726 = vmatmul.mubr.msk.bf16.gmra.mxu0 %vm273_vm1, %v852_v6  ;;  %742 = vmatmul.mubr.msk.bf16.gmra.mxu1 %vm273_vm1, %v853_v7 }
  0x26   : > { %729 = vmatprep.mubr.msk.bf16.mxu0 %vm950_vm0, %v949_v1  ;;  %745 = vmatprep.mubr.msk.bf16.mxu1 %vm950_vm0, %v949_v1 }
  0x2d   : > { %730 = vmatmul.mubr.msk.bf16.gmra.mxu0 %vm273_vm1, %v854_v8  ;;  %746 = vmatmul.mubr.msk.bf16.gmra.mxu1 %vm273_vm1, %v855_v9 }
  0x2e   : > { %733 = vmatprep.mubr.msk.bf16.mxu0 %vm950_vm0, %v949_v1 }
  0x35   : > { %734 = vmatmul.mubr.msk.bf16.gmra.mxu0 %vm273_vm1, %v856_v10 }
  0xdd   : > { %v329_v12 = vpop.f32.mrf.mxu0  ;;  %v361_v13 = vpop.f32.mrf.mxu1 }
  0xde   : > { %v330_v14 = vadd.f32 %v674_v11, %v329_v12  ;;  %v362_v15 = vadd.f32 %v674_v11, %v361_v13 }
  0xdf   : > { %v723_v16 = vpop.f32.mrf.mxu0  ;;  %v739_v17 = vpop.f32.mrf.mxu1 }
  0xe0   : > { %385 = vst.msk [vmem:[%s1035_s10] sm:$0xff] %vm384_vm2, %v330_v14  ;;  %393 = vst.msk [vmem:[%s1035_s10 + $0x40] sm:$0xff] %vm384_vm2, %v362_v15 }
  0xe1   : > { %v332_v18 = vpop.f32.mrf.mxu0  ;;  %v364_v19 = vpop.f32.mrf.mxu1 }
  0xe2   : > { %v333_v20 = vadd.f32 %v674_v11, %v332_v18  ;;  %v365_v21 = vadd.f32 %v674_v11, %v364_v19 }
  0xe3   : > { %v724_v22 = vpop.f32.mrf.mxu0  ;;  %v740_v23 = vpop.f32.mrf.mxu1 }
  0xe4   : > { %386 = vst.msk [vmem:[%s1035_s10 + $0x8] sm:$0xff] %vm384_vm2, %v333_v20  ;;  %394 = vst.msk [vmem:[%s1035_s10 + $0x48] sm:$0xff] %vm384_vm2, %v365_v21 }
  0xe5   : > { %v337_v24 = vpop.f32.mrf.mxu0  ;;  %v369_v25 = vpop.f32.mrf.mxu1 }
  0xe6   : > { %v338_v26 = vadd.f32 %v674_v11, %v337_v24  ;;  %v370_v27 = vadd.f32 %v674_v11, %v369_v25 }
  0xe7   : > { %v727_v28 = vpop.f32.mrf.mxu0  ;;  %v743_v29 = vpop.f32.mrf.mxu1 }
  0xe8   : > { %387 = vst.msk [vmem:[%s1035_s10 + $0x10] sm:$0xff] %vm384_vm2, %v338_v26  ;;  %395 = vst.msk [vmem:[%s1035_s10 + $0x50] sm:$0xff] %vm384_vm2, %v370_v27 }
  0xe9   : > { %v340_v30 = vpop.f32.mrf.mxu0  ;;  %v372_v31 = vpop.f32.mrf.mxu1 }
  0xea   : > { %v341_v32 = vadd.f32 %v674_v11, %v340_v30  ;;  %v373_v33 = vadd.f32 %v674_v11, %v372_v31 }
  0xeb   : > { %v728_v34 = vpop.f32.mrf.mxu0  ;;  %v744_v35 = vpop.f32.mrf.mxu1 }
  0xec   : > { %388 = vst.msk [vmem:[%s1035_s10 + $0x18] sm:$0xff] %vm384_vm2, %v341_v32  ;;  %396 = vst.msk [vmem:[%s1035_s10 + $0x58] sm:$0xff] %vm384_vm2, %v373_v33 }
  0xed   : > { %v345_v36 = vpop.f32.mrf.mxu0  ;;  %v377_v37 = vpop.f32.mrf.mxu1 }
  0xee   : > { %v346_v38 = vadd.f32 %v674_v11, %v345_v36  ;;  %v378_v39 = vadd.f32 %v674_v11, %v377_v37 }
  0xef   : > { %v731_v40 = vpop.f32.mrf.mxu0  ;;  %v747_v41 = vpop.f32.mrf.mxu1 }
  0xf0   : > { %389 = vst.msk [vmem:[%s1035_s10 + $0x20] sm:$0xff] %vm384_vm2, %v346_v38  ;;  %397 = vst.msk [vmem:[%s1035_s10 + $0x60] sm:$0xff] %vm384_vm2, %v378_v39 }
  0xf1   : > { %v348_v42 = vpop.f32.mrf.mxu0  ;;  %v380_v43 = vpop.f32.mrf.mxu1 }
  0xf2   : > { %v349_v44 = vadd.f32 %v674_v11, %v348_v42  ;;  %v381_v45 = vadd.f32 %v674_v11, %v380_v43 }
  0xf3   : > { %v732_v46 = vpop.f32.mrf.mxu0  ;;  %v748_v47 = vpop.f32.mrf.mxu1 }
  0xf4   : > { %390 = vst.msk [vmem:[%s1035_s10 + $0x28] sm:$0xff] %vm384_vm2, %v349_v44  ;;  %398 = vst.msk [vmem:[%s1035_s10 + $0x68] sm:$0xff] %vm384_vm2, %v381_v45 }
  0xf5   : > { %v353_v48 = vpop.f32.mrf.mxu0 }
  0xf6   : > { %v354_v49 = vadd.f32 %v674_v11, %v353_v48 }
  0xf7   : > { %v735_v50 = vpop.f32.mrf.mxu0 }
  0xf8   : > { %391 = vst.msk [vmem:[%s1035_s10 + $0x30] sm:$0xff] %vm384_vm2, %v354_v49  ;;  %405 = sbr.rel (!%p996_p4) target bundleno = 306 (0x132), region = 36 }
  0xf9   : > { %v356_v51 = vpop.f32.mrf.mxu0 }
  0xfa   : > { %v357_v52 = vadd.f32 %v674_v11, %v356_v51 }
  0xfb   : > { %v736_v53 = vpop.f32.mrf.mxu0 }
  0xfc   : > { %392 = vst.msk [vmem:[%s1035_s10 + $0x38] sm:$0xff] %vm384_vm2, %v357_v52 }
  0xfd   : > { %s1168_s11 = smov (!%p408_p8, %s407_s11), 14 }
  0xfe   : > { %s692_s21 = sshll.u32 %s1168_s11, 7 }
  0xff   : > { %p695_p9 = scmp.eq.s32.totalorder %s692_s21, 0 }
 0x100   : > { %857 = sdivrem.u32 (!%p695_p9), %s1168_s11, 14 }
 0x101   : > { %416 = sbr.rel (%p695_p9) target bundleno = 306 (0x132), region = 40 }
 0x109   : > { %s1078_s20 = spop.drf %857 }
 0x10a   : > { %p696_p10 = scmp.le.s32.totalorder %s1078_s20, 0 }
 0x10b   : > { %s1161_s15 = smov (!%p696_p10), %s1072_s18  ;;  %s1162_s22 = smov (!%p696_p10), %s1035_s10 }
 0x10c   : > { %625 = sbr.rel (%p696_p10) target bundleno = 281 (0x119), region = 116  ;;  %s1087_s23 = smov (!%p696_p10), 0  }
 0x10d   : > { %s1089_s24 = smov (!%p696_p10), 0  }
 0x111 LB: >> { %v507_v54 = vld [vmem:[%s923_s22] sm:$0xff]  ;;  %v509_v55 = vld [vmem:[%s923_s22 + $0x8] sm:$0xff]  ;;  %v511_v56 = vld [vmem:[%s923_s22 + $0x10] sm:$0xff]  ;;  %s535_s25 = sadd.s32 1, %s927_s23  ;;  %s501_s24 = sadd.s32 1, %s931_s24   ;;  %s931_s24 = sphi %s1089_s24, %s501_s24   ;;  %s927_s23 = sphi %s1087_s23, %s1163_s23   ;;  %s923_s22 = sphi %s1162_s22, %s540_s22   ;;  %s919_s15 = sphi %s1161_s15, %s541_s15  }
 0x112   : >> { %508 = vst [vmem:[%s919_s15] sm:$0xff] %v507_v54  ;;  %510 = vst [vmem:[%s919_s15 + $0x8] sm:$0xff] %v509_v55  ;;  %v513_v57 = vld [vmem:[%s923_s22 + $0x18] sm:$0xff]  ;;  %v515_v58 = vld [vmem:[%s923_s22 + $0x20] sm:$0xff]  ;;  %p536_p11 = scmp.ge.s32.totalorder %s535_s25, %s1078_s20  ;;  %p500_p12 = scmp.ge.s32.totalorder %s501_s24, %s1078_s20 }
 0x113   : >> { %512 = vst [vmem:[%s919_s15 + $0x10] sm:$0xff] %v511_v56  ;;  %v517_v59 = vld [vmem:[%s923_s22 + $0x28] sm:$0xff]  ;;  %514 = vst [vmem:[%s919_s15 + $0x18] sm:$0xff] %v513_v57  ;;  %v519_v60 = vld [vmem:[%s923_s22 + $0x30] sm:$0xff] }
 0x114   : >> { %516 = vst [vmem:[%s919_s15 + $0x20] sm:$0xff] %v515_v58  ;;  %518 = vst [vmem:[%s919_s15 + $0x28] sm:$0xff] %v517_v59  ;;  %v521_v61 = vld [vmem:[%s923_s22 + $0x38] sm:$0xff]  ;;  %v523_v62 = vld [vmem:[%s923_s22 + $0x40] sm:$0xff]  ;;  %s1170_s25 = smov (%p536_p11, %s535_s25), 0  ;;  %503 = sbr.rel (!%p500_p12) target bundleno = 273 (0x111), region = 122 }
 0x115   : >> { %520 = vst [vmem:[%s919_s15 + $0x30] sm:$0xff] %v519_v60  ;;  %522 = vst [vmem:[%s919_s15 + $0x38] sm:$0xff] %v521_v61  ;;  %v525_v63 = vld [vmem:[%s923_s22 + $0x48] sm:$0xff]  ;;  %v527_v0 = vld [vmem:[%s923_s22 + $0x50] sm:$0xff]  ;;  %s538_s26 = smul.u32 112, %s1170_s25  ;;  %s1163_s23 = smov %s1170_s25 }
 0x116   : >> { %524 = vst [vmem:[%s919_s15 + $0x40] sm:$0xff] %v523_v62  ;;  %v529_v1 = vld [vmem:[%s923_s22 + $0x58] sm:$0xff]  ;;  %526 = vst [vmem:[%s919_s15 + $0x48] sm:$0xff] %v525_v63  ;;  %v531_v2 = vld [vmem:[%s923_s22 + $0x60] sm:$0xff] }
 0x117   : >> { %528 = vst [vmem:[%s919_s15 + $0x50] sm:$0xff] %v527_v0  ;;  %530 = vst [vmem:[%s919_s15 + $0x58] sm:$0xff] %v529_v1  ;;  %v533_v3 = vld [vmem:[%s923_s22 + $0x68] sm:$0xff]  ;;  %s540_s22 = scalar_lea.vmem %s1035_s10, %s538_s26 [#allocation2]  }
 0x118   : >> { %532 = vst [vmem:[%s919_s15 + $0x60] sm:$0xff] %v531_v2  ;;  %534 = vst [vmem:[%s919_s15 + $0x68] sm:$0xff] %v533_v3  ;;  %s541_s15 = scalar_lea.vmem %s1072_s18, %s538_s26  }
 0x119 PF: > { %859 = sdivrem.u32 %s1168_s11, 14 }
 0x11a   : > { %s697_s27 = smul.u32 112, %s1078_s20 }
 0x11c   : > { %s546_s28 = scalar_lea.vmem %s1035_s10, %s697_s27 [#allocation2]   ;;  %s548_s29 = scalar_lea.vmem %s1072_s18, %s697_s27  }
 0x122   : > { %s860_s30 = spop.drf %859 }
 0x123   : > { %p699_p13 = scmp.le.s32.totalorder %s860_s30, 0 }
 0x124   : > { %s933_s4 = smov (!%p699_p13), %s548_s29   ;;  %s937_s5 = smov (!%p699_p13), %s546_s28  }
 0x125   : > { %639 = sbr.rel (%p699_p13) target bundleno = 306 (0x132), region = 127  ;;  %s941_s6 = smov (!%p699_p13), 0  }
 0x126   : > { %s945_s7 = smov (!%p699_p13), 0  }
 0x12a LB: >> { %v558_v4 = vld [vmem:[%s939_s5] sm:$0xff]  ;;  %s560_s8 = sadd.s32 1, %s943_s6  ;;  %s552_s7 = sadd.s32 1, %s947_s7   ;;  %s947_s7 = sphi %s945_s7, %s552_s7   ;;  %s943_s6 = sphi %s941_s6, %s942_s6   ;;  %s939_s5 = sphi %s937_s5, %s565_s5   ;;  %s935_s4 = sphi %s933_s4, %s566_s4  }
 0x12b   : >> { %559 = vst [vmem:[%s935_s4] sm:$0xff] %v558_v4  ;;  %p561_p0 = scmp.ge.s32.totalorder %s560_s8, %s860_s30  ;;  %p551_p1 = scmp.ge.s32.totalorder %s552_s7, %s860_s30 }
 0x12d   : >> { %s1172_s8 = smov (%p561_p0, %s560_s8), 0  ;;  %554 = sbr.rel (!%p551_p1) target bundleno = 298 (0x12a), region = 133 }
 0x12e   : >> { %s700_s9 = sshll.u32 %s1172_s8, 3  ;;  %s942_s6 = smov %s1172_s8  }
 0x12f   : >> { %s565_s5 = scalar_lea.vmem %s546_s28, %s700_s9 [#allocation2]   ;;  %s566_s4 = scalar_lea.vmem %s548_s29, %s700_s9  }
 0x132 PF: > { %p10_p2 = scmp.ge.s32.totalorder %s986_s16, 4   ;;  %s1164_s12 = smov %s911_s13 }
 0x133   : > { %s1165_s13 = smov %s994_s19  ;;  %s1166_s14 = smov %s986_s16 }
 0x134   :  { %12 = sbr.rel (!%p10_p2) target bundleno = 2 (0x2), region = 144 }

</bundles_post_ra>
